<compile_context>
chip_gen: v7x
topology: tpu7x:2x2x1
jax: 0.10.0
libtpu: 0.0.40
codegen_flags: <defaults>
</compile_context>

<pallas_src>
import functools

import jax
import jax.numpy as jnp
from jax import lax
from jax.experimental import pallas as pl
from jax.experimental.pallas import tpu as pltpu

LANES = 128


def _chip_config():
    """Return (num_core_splits, target_block_bytes_per_input, vmem_limit_bytes).

    Chosen per generation:
      v7x : 2 TCs, 64 MiB VMEM/TC, 3.2 TB/s  -> 2-way split, 4 MiB blocks
      v5e : 1 TC, 128 MiB VMEM, ~0.8 TB/s    -> 1 split,     2 MiB blocks
      v6e / unknown : 1 TC, 128 MiB VMEM     -> 1 split,     4 MiB blocks
    All choices are safe on any chip (pipeline VMEM = 2 inputs x 2 bufs x block).
    """
    kind = ""
    try:
        kind = jax.devices()[0].device_kind.lower()
    except Exception:
        pass

    if "v7" in kind:
        num_splits, block_bytes, vmem_limit = 2, 4 << 20, 48 << 20
    elif "v5 lite" in kind or "v5e" in kind or "v5lite" in kind:
        num_splits, block_bytes, vmem_limit = 1, 2 << 20, 32 << 20
    else:  # v6e / older / unknown — conservative and safe everywhere.
        num_splits, block_bytes, vmem_limit = 1, 4 << 20, 48 << 20

    # Never request more scoped VMEM than ~3/4 of physical capacity.
    try:
        cap = int(pltpu.get_tpu_info().vmem_capacity_bytes)
        vmem_limit = min(vmem_limit, (cap * 3) // 4)
    except Exception:
        pass
    return num_splits, block_bytes, vmem_limit


def _ssd_kernel(yhat_ref, y_ref, out_ref, acc_ref, *,
                rows, row_tile, tiles_per_core, tiles_total, need_mask):
    """Accumulate per-lane partial sums of squared differences.

    acc_ref : VMEM (1, LANES) f32 running per-lane sum for this core-split.
    out_ref : (1, 1, LANES) block of the (num_splits, 1, LANES) output.
    Cross-lane reduce, mean and sqrt happen in the wrapper (tiny).
    """
    c = pl.program_id(0)   # core-split index ("parallel")
    j = pl.program_id(1)   # reduction step   ("arbitrary")

    @pl.when(j == 0)
    def _():
        acc_ref[...] = jnp.zeros_like(acc_ref)

    # Upcast inside the kernel; single f32 accumulator per lane is plenty for
    # realistic sizes (the 128-lane split already bounds per-lane counts).
    d = yhat_ref[...].astype(jnp.float32) - y_ref[...].astype(jnp.float32)

    if need_mask:
        tile_idx = c * tiles_per_core + j           # un-clamped tile index
        is_edge = tile_idx >= tiles_total - 1       # boundary or duplicate tile

        @pl.when(is_edge)
        def _():
            # Rows past the real data (overhang of the last tile, or an
            # entirely-duplicated clamped tile) are zeroed BEFORE squaring so
            # garbage / NaN in the padded region cannot propagate.
            row_ids = tile_idx * row_tile + lax.broadcasted_iota(
                jnp.int32, (row_tile, LANES), 0)
            dm = jnp.where(row_ids < rows, d, 0.0)
            acc_ref[...] += jnp.sum(dm * dm, axis=0, keepdims=True)

        @pl.when(jnp.logical_not(is_edge))
        def _():
            acc_ref[...] += jnp.sum(d * d, axis=0, keepdims=True)
    else:
        acc_ref[...] += jnp.sum(d * d, axis=0, keepdims=True)

    @pl.when(j == tiles_per_core - 1)
    def _():
        out_ref[...] = acc_ref[...].reshape(1, 1, LANES)


def rmse_loss(yhat, y, eps=1e-6):
    assert yhat.shape == y.shape, "yhat and y must have the same shape"
    n_elems = yhat.size
    if n_elems == 0:
        return jnp.float32(jnp.nan)   # torch MSELoss on empty input is nan

    flat_yhat = yhat.reshape(-1)
    flat_y = y.reshape(-1)

    # Lane-aligned prefix goes through the kernel; the <128-element tail is a
    # trivial plain-JAX correction (no jnp.pad full-array copies).
    tail = n_elems % LANES
    n_main = n_elems - tail

    tail_ssd = jnp.float32(0.0)
    if tail:
        td = (flat_yhat[n_main:].astype(jnp.float32)
              - flat_y[n_main:].astype(jnp.float32))
        tail_ssd = jnp.sum(td * td)

    if n_main == 0:
        ssd = tail_ssd
    else:
        main_yhat = flat_yhat if tail == 0 else flat_yhat[:n_main]
        main_y = flat_y if tail == 0 else flat_y[:n_main]

        rows = n_main // LANES
        yhat2d = main_yhat.reshape(rows, LANES)
        y2d = main_y.reshape(rows, LANES)

        num_splits, block_bytes, vmem_limit = _chip_config()

        # Byte-based tile height, rounded to the dtype's sublane pack
        # (8 rows/vreg for f32, 16 for bf16, 32 for 8-bit types).
        itemsize = jnp.dtype(yhat2d.dtype).itemsize
        sub_pack = max(8, 32 // max(itemsize, 1))
        rows_per_block = max(
            sub_pack,
            (block_bytes // (LANES * itemsize)) // sub_pack * sub_pack)
        # Full second-minor dim is always a legal block; otherwise a multiple
        # of sub_pack (>= 8) satisfies the (8, 128) constraint.
        row_tile = rows if rows <= rows_per_block else rows_per_block

        tiles_total = -(-rows // row_tile)
        num_splits = min(num_splits, tiles_total)   # never duplicate whole passes
        tiles_per_core = -(-tiles_total // num_splits)
        need_mask = (num_splits * tiles_per_core * row_tile) != rows

        def in_map(c, j):
            # Clamp so a block is never entirely out of bounds; duplicated /
            # overhanging rows are zeroed by the (gated) in-kernel mask.
            return (jnp.minimum(c * tiles_per_core + j, tiles_total - 1), 0)

        kernel = functools.partial(
            _ssd_kernel, rows=rows, row_tile=row_tile,
            tiles_per_core=tiles_per_core, tiles_total=tiles_total,
            need_mask=need_mask)

        cost = pl.CostEstimate(
            flops=3 * n_main,
            transcendentals=0,
            bytes_accessed=2 * n_main * itemsize + num_splits * LANES * 4)

        # TODO(synk): on v7x, verify the leading "parallel" axis actually
        # shards across both TensorCores; if a profile shows one TC idle,
        # switch that axis to pltpu.CORE_PARALLEL.
        partials = pl.pallas_call(
            kernel,
            out_shape=jax.ShapeDtypeStruct((num_splits, 1, LANES), jnp.float32),
            grid_spec=pltpu.PrefetchScalarGridSpec(
                num_scalar_prefetch=0,
                grid=(num_splits, tiles_per_core),
                in_specs=[
                    pl.BlockSpec((row_tile, LANES), in_map),
                    pl.BlockSpec((row_tile, LANES), in_map),
                ],
                out_specs=pl.BlockSpec((1, 1, LANES), lambda c, j: (c, 0, 0)),
                scratch_shapes=[pltpu.VMEM((1, LANES), jnp.float32)],
            ),
            compiler_params=pltpu.CompilerParams(
                dimension_semantics=("parallel", "arbitrary"),
                vmem_limit_bytes=vmem_limit),
            cost_estimate=cost,
        )(yhat2d, y2d)

        ssd = jnp.sum(partials) + tail_ssd

    # Tiny epilogue: mean over the TRUE element count, add eps, sqrt.
    return jnp.sqrt(ssd / jnp.float32(n_elems) + jnp.float32(eps))


if __name__ == "__main__":
    key = jax.random.PRNGKey(0)
    k1, k2, k3, k4 = jax.random.split(key, 4)

    # Lane-aligned case (matches the module's NCHW-style usage).
    shape = (2, 4, 16, 16)
    yhat = jax.random.normal(k1, shape, dtype=jnp.float32)
    y = jax.random.normal(k2, shape, dtype=jnp.float32)
    loss = jax.block_until_ready(rmse_loss(yhat, y, eps=1e-6))
    ref = jnp.sqrt(jnp.mean((yhat - y) ** 2) + 1e-6)
    assert jnp.allclose(loss, ref, rtol=1e-5, atol=1e-6), (loss, ref)

    # Unaligned element count: exercises the tail-correction path.
    yhat2 = jax.random.normal(k3, (5, 50), dtype=jnp.float32)
    y2 = jax.random.normal(k4, (5, 50), dtype=jnp.float32)
    loss2 = jax.block_until_ready(rmse_loss(yhat2, y2, eps=1e-6))
    ref2 = jnp.sqrt(jnp.mean((yhat2 - y2) ** 2) + 1e-6)
    assert jnp.allclose(loss2, ref2, rtol=1e-5, atol=1e-6), (loss2, ref2)

    print("KERNEL_OK")
</pallas_src>

<mosaic_0001>
module attributes {stable_mosaic.version = 11 : i64} {
  func.func @_ssd_kernel(%arg0: i32, %arg1: i32, %arg2: memref<16x128xf32, #tpu.memory_space<vmem>>, %arg3: memref<16x128xf32, #tpu.memory_space<vmem>>, %arg4: memref<1x1x128xf32, #tpu.memory_space<vmem>>, %arg5: memref<1x128xf32, #tpu.memory_space<vmem>>) attributes {dimension_semantics = [#tpu.dimension_semantics<parallel>, #tpu.dimension_semantics<arbitrary>], iteration_bounds = array<i64: 1, 1>, scalar_prefetch = 0 : i64, scratch_operands = 1 : i64, tpu.core_type = #tpu.core_type<tc>, window_params = [{transform_indices = @transform_0, window_bounds = array<i64: 16, 128>}, {transform_indices = @transform_1, window_bounds = array<i64: 16, 128>}, {transform_indices = @transform_2, window_bounds = array<i64: 1, 1, 128>}]} {
    %c0_i32 = arith.constant 0 : i32
    %0 = arith.cmpi eq, %arg1, %c0_i32 : i32
    %1 = arith.extui %0 : i1 to i32
    %c0_i32_0 = arith.constant 0 : i32
    %2 = arith.cmpi ne, %1, %c0_i32_0 : i32
    scf.if %2 {
      %cst_10 = arith.constant 0.000000e+00 : f32
      %15 = vector.broadcast %cst_10 : f32 to vector<1x128xf32>
      %c0_11 = arith.constant 0 : index
      %c0_12 = arith.constant 0 : index
      %16 = vector.load %arg5[%c0_11, %c0_12] : memref<1x128xf32, #tpu.memory_space<vmem>>, vector<1x128xf32>
      tpu.vector_store %arg5[%c0_11, %c0_12], %15 {strides = array<i32>} : memref<1x128xf32, #tpu.memory_space<vmem>>, vector<1x128xf32>,
    } else {
    }
    %c0 = arith.constant 0 : index
    %c0_1 = arith.constant 0 : index
    %3 = vector.load %arg2[%c0, %c0_1] : memref<16x128xf32, #tpu.memory_space<vmem>>, vector<16x128xf32>
    %c0_2 = arith.constant 0 : index
    %c0_3 = arith.constant 0 : index
    %4 = vector.load %arg3[%c0_2, %c0_3] : memref<16x128xf32, #tpu.memory_space<vmem>>, vector<16x128xf32>
    %5 = arith.subf %3, %4 : vector<16x128xf32>
    %c0_4 = arith.constant 0 : index
    %c0_5 = arith.constant 0 : index
    %6 = vector.load %arg5[%c0_4, %c0_5] : memref<1x128xf32, #tpu.memory_space<vmem>>, vector<1x128xf32>
    %7 = arith.mulf %5, %5 : vector<16x128xf32>
    %cst = arith.constant dense<0.000000e+00> : vector<128xf32>
    %8 = vector.multi_reduction <add>, %7, %cst [0] : vector<16x128xf32> to vector<128xf32>
    %9 = vector.shape_cast %8 : vector<128xf32> to vector<1x128xf32>
    %10 = arith.addf %6, %9 : vector<1x128xf32>
    %c0_6 = arith.constant 0 : index
    %c0_7 = arith.constant 0 : index
    %11 = vector.load %arg5[%c0_6, %c0_7] : memref<1x128xf32, #tpu.memory_space<vmem>>, vector<1x128xf32>
    tpu.vector_store %arg5[%c0_6, %c0_7], %10 {strides = array<i32>} : memref<1x128xf32, #tpu.memory_space<vmem>>, vector<1x128xf32>,
    %c0_i32_8 = arith.constant 0 : i32
    %12 = arith.cmpi eq, %arg1, %c0_i32_8 : i32
    %13 = arith.extui %12 : i1 to i32
    %c0_i32_9 = arith.constant 0 : i32
    %14 = arith.cmpi ne, %13, %c0_i32_9 : i32
    scf.if %14 {
      %c0_10 = arith.constant 0 : index
      %c0_11 = arith.constant 0 : index
      %15 = vector.load %arg5[%c0_10, %c0_11] : memref<1x128xf32, #tpu.memory_space<vmem>>, vector<1x128xf32>
      %16 = vector.shape_cast %15 : vector<1x128xf32> to vector<1x1x128xf32>
      %c0_12 = arith.constant 0 : index
      %c0_13 = arith.constant 0 : index
      %c0_14 = arith.constant 0 : index
      %17 = vector.load %arg4[%c0_12, %c0_13, %c0_14] : memref<1x1x128xf32, #tpu.memory_space<vmem>>, vector<1x1x128xf32>
      tpu.vector_store %arg4[%c0_12, %c0_13, %c0_14], %16 {strides = array<i32>} : memref<1x1x128xf32, #tpu.memory_space<vmem>>, vector<1x1x128xf32>,
    } else {
    }
    return
  }
  func.func @transform_0(%arg0: i32, %arg1: i32) -> (i32, i32) {
    %c1_i32 = arith.constant 1 : i32
    %0 = arith.muli %arg0, %c1_i32 : i32
    %1 = arith.addi %0, %arg1 : i32
    %c0_i32 = arith.constant 0 : i32
    %2 = arith.minsi %1, %c0_i32 : i32
    %c0_i32_0 = arith.constant 0 : i32
    %c0_i32_1 = arith.constant 0 : i32
    return %2, %c0_i32_0 : i32, i32
  }
  func.func @transform_1(%arg0: i32, %arg1: i32) -> (i32, i32) {
    %c1_i32 = arith.constant 1 : i32
    %0 = arith.muli %arg0, %c1_i32 : i32
    %1 = arith.addi %0, %arg1 : i32
    %c0_i32 = arith.constant 0 : i32
    %2 = arith.minsi %1, %c0_i32 : i32
    %c0_i32_0 = arith.constant 0 : i32
    %c0_i32_1 = arith.constant 0 : i32
    return %2, %c0_i32_0 : i32, i32
  }
  func.func @transform_2(%arg0: i32, %arg1: i32) -> (i32, i32, i32) {
    %c0_i32 = arith.constant 0 : i32
    %c0_i32_0 = arith.constant 0 : i32
    %c0_i32_1 = arith.constant 0 : i32
    return %arg0, %c0_i32, %c0_i32_0 : i32, i32, i32
  }
}

</mosaic_0001>

<bundles_post_ra>
// kernel: tpu_custom_call.1
= control target key start
LH: loop header
LB: loop body
LE: loop exit
PB: predicated region body
PF: predicated region fallthrough
CT: control target
= control target key end

     0   :  { %7 = vsyncpa [#allocation4], 0  ;;  %s243_s0 = inlined_call_operand.hbm [shape: f32[16,128], index: 0, kind: input, shape index: {}]   ;;  %s244_s1 = inlined_call_operand.hbm [shape: f32[16,128], index: 1, kind: input, shape index: {}]   ;;  %s245_s2 = inlined_call_operand.hbm [shape: f32[1,1,128], index: 2, kind: output, shape index: {}]  }
   0x1   :  { %8 = vsyncpa [#allocation7], 0 }
   0x2   :  { %9 = vsyncpa [#allocation5], 0  ;;  %s186_s9 = smov [#allocation3]   ;;  %s114_s13 = scalar_lea.hbm %s243_s0, 256 }
   0x3   :  { %s21_s10 = sshll.u32 %s186_s9, 4  ;;  %p115_p0 = scmp.ne.s32.totalorder %s243_s0, %s114_s13  ;;  %s22_s10 = int_to_ptr.vmem [resolvable:$true] %s21_s10 }
   0x4   :  { %p118_p1 = scmp.lt.u32.totalorder %s114_s13, %s243_s0 }
   0x6   :  { %p120_p2 = pnand %p118_p1, %p115_p0 }
   0x8   :  { %123 = shalt.err (!%p120_p2)
}
   0x9   :  { %s124_s18 = scalar_lea.vmem %s22_s10, 256  ;;  %p129_p4 = scmp.lt.s32.totalorder %s22_s10, %s22_s10 }
   0xa   :  { %p125_p3 = scmp.ne.s32.totalorder %s22_s10, %s124_s18  ;;  %p130_p5 = scmp.lt.s32.totalorder %s124_s18, %s124_s18 }
   0xc   :  { %p131_p6 = por %p130_p5, %p129_p4 }
   0xe   :  { %p132_p7 = pnand %p131_p6, %p125_p3 }
  0x10   :  { %135 = shalt.err (!%p132_p7)
}
  0x11   :  { %s187_s19 = smov 128   ;;  %s188_s20 = smov 8  }
  0x12   :  { %27 = dma.hbm_to_vmem [thread:$0]  %s243_s0, 256, %s22_s10, [#allocation4], %s187_s19, %s187_s19, %s188_s20  }
  0x13   :  { %s189_s23 = smov [#allocation6]   ;;  %s136_s27 = scalar_lea.hbm %s244_s1, 256 }
  0x14   :  { %s39_s24 = sshll.u32 %s189_s23, 4  ;;  %p137_p8 = scmp.ne.s32.totalorder %s244_s1, %s136_s27  ;;  %s40_s24 = int_to_ptr.vmem [resolvable:$true] %s39_s24 }
  0x15   :  { %p140_p9 = scmp.lt.u32.totalorder %s136_s27, %s244_s1 }
  0x17   :  { %p142_p10 = pnand %p140_p9, %p137_p8 }
  0x19   :  { %145 = shalt.err (!%p142_p10)
}
  0x1a   :  { %s146_s4 = scalar_lea.vmem %s40_s24, 256  ;;  %p151_p12 = scmp.lt.s32.totalorder %s40_s24, %s40_s24 }
  0x1b   :  { %p147_p11 = scmp.ne.s32.totalorder %s40_s24, %s146_s4  ;;  %p152_p13 = scmp.lt.s32.totalorder %s146_s4, %s146_s4 }
  0x1d   :  { %p153_p0 = por %p152_p13, %p151_p12 }
  0x1f   :  { %p154_p1 = pnand %p153_p0, %p147_p11 }
  0x21   :  { %157 = shalt.err (!%p154_p1)
}
  0x22   :  { %45 = dma.hbm_to_vmem [thread:$0]  %s244_s1, 256, %s40_s24, [#allocation7], %s187_s19, %s187_s19, %s188_s20  }
  0x23   :  { %180 = dma.done.wait [#allocation4], 256  }
  0x24   :  { %181 = vsyncadd [#allocation4], 4294967040 }
  0x25   :  { %182 = dma.done.wait [#allocation7], 256  }
  0x26   :  { %183 = vsyncadd [#allocation7], 4294967040  ;;  %v190_v0 = vmov 0.0   ;;  %v65_v1 = vld [vmem:[#allocation3] sm:$0xff]  ;;  %v66_v2 = vld [vmem:[#allocation3 + $0x8] sm:$0xff]  ;;  %s191_s1 = smov [#allocation8]  }
  0x27   :  { %64 = vst [vmem:[#allocation2] sm:$0x1] %v190_v0  ;;  %v67_v3 = vld [vmem:[#allocation6] sm:$0xff]  ;;  %v68_v4 = vld [vmem:[#allocation6 + $0x8] sm:$0xff]  ;;  %s94_s6 = sshll.u32 %s191_s1, 4  ;;  %s95_s6 = int_to_ptr.vmem [resolvable:$true] %s94_s6 }
  0x28   :  { %v69_v5 = vsub.f32 %v65_v1, %v67_v3  ;;  %v70_v6 = vsub.f32 %v66_v2, %v68_v4  ;;  %s158_s7 = scalar_lea.vmem %s95_s6, 16  ;;  %s162_s8 = scalar_lea.vmem %s95_s6, 32 }
  0x29   :  { %p159_p2 = scmp.ne.s32.totalorder %s95_s6, %s158_s7  ;;  %p163_p3 = scmp.lt.s32.totalorder %s95_s6, %s95_s6 }
  0x2a   :  { %v72_v7 = vmul.f32 %v69_v5, %v69_v5  ;;  %v73_v8 = vmul.f32 %v70_v6, %v70_v6  ;;  %p164_p4 = scmp.lt.s32.totalorder %s162_s8, %s158_s7 }
  0x2c   :  { %v74_v9 = vadd.f32 %v73_v8, %v72_v7  ;;  %p165_p5 = por %p164_p4, %p163_p3 }
  0x2e   :  { %v75_v10 = vrot.slane %v74_v9, 4  ;;  %v71_v15 = vld [vmem:[#allocation2] sm:$0x1]  ;;  %p166_p6 = pnand %p165_p5, %p159_p2 }
  0x30   :  { %v76_v11 = vadd.f32 %v75_v10, %v74_v9 }
  0x32   :  { %v77_v12 = vrot.slane %v76_v11, 2 }
  0x34   :  { %v78_v13 = vadd.f32 %v77_v12, %v76_v11 }
  0x36   :  { %v79_v14 = vrot.slane %v78_v13, 1 }
  0x38   :  { %v80_v16 = vadd.f32 %v79_v14, %v78_v13 }
  0x3a   :  { %v81_v17 = vadd.f32 %v80_v16, %v71_v15 }
  0x3c   :  { %82 = vst [vmem:[#allocation2] sm:$0x1] %v81_v17 }
  0x43   :  { %v86_v18 = vld [vmem:[#allocation2] sm:$0x1] }
  0x44   :  { %87 = vst [vmem:[#allocation8] sm:$0x1] %v86_v18 }
  0x45   :  { %169 = shalt.err (!%p166_p6)
}
  0x46   :  { %s170_s11 = scalar_lea.hbm %s245_s2, 16 }
  0x47   :  { %p171_p7 = scmp.ne.s32.totalorder %s245_s2, %s170_s11  ;;  %p174_p8 = scmp.lt.u32.totalorder %s170_s11, %s245_s2 }
  0x49   :  { %p176_p9 = pnand %p174_p8, %p171_p7 }
  0x4b   :  { %179 = shalt.err (!%p176_p9)
}
  0x4c   :  { %97 = dma.vmem_to_hbm [thread:$0]  %s95_s6, 16, %s245_s2, [#allocation5]  }
  0x4d   :  { %184 = dma.done.wait [#allocation5], 16  }
  0x4e   :  { %185 = vsyncadd [#allocation5], 4294967280 }
  0x4f   :  { %101 = vsyncpa [#allocation4], 1 }
  0x50   :  { %102 = vsyncpa [#allocation7], 1 }
  0x51   :  { %103 = vsyncpa [#allocation5], 1 }

</bundles_post_ra>
